<compile_context>
chip_gen: v5e
topology: v5e:2x2
jax: 0.10.0
libtpu: 0.0.40
codegen_flags: <defaults>
</compile_context>

<pallas_src>
import functools
from typing import NamedTuple

import jax
import jax.numpy as jnp
from jax.experimental import pallas as pl
from jax.experimental.pallas import tpu as pltpu

_LANE = 128
_SUBLANE = 8
_DEFAULT_BLOCK_B = 512          # target batch-tile rows (amortize per-step overhead)
_VMEM_HEADROOM = 16 << 20       # leave room for compiler-internal scratch


def _device_kind() -> str:
    try:
        return jax.devices()[0].device_kind.lower()
    except Exception:
        return ""


_KIND = _device_kind()
_IS_V7 = "v7" in _KIND
_IS_V6 = "v6" in _KIND
_NUM_TC = 2 if _IS_V7 else 1                     # TensorCores sharing the grid
_MXU_ROWS = 256 if (_IS_V6 or _IS_V7) else 128   # snap batch tile to MXU M-dim


@functools.lru_cache(maxsize=1)
def _vmem_capacity_bytes() -> int:
    try:
        return int(pltpu.get_tpu_info().vmem_capacity_bytes)
    except Exception:
        return (64 << 20) if _IS_V7 else (128 << 20)


def _round_up(x, m):
    return ((x + m - 1) // m) * m


def _pad2(a, rows, cols):
    return jnp.pad(a, ((0, rows - a.shape[0]), (0, cols - a.shape[1])))


# --------------------------------------------------------------------------- #
# Kernel
# --------------------------------------------------------------------------- #
def _mlp_kernel(x_ref, w1_ref, b1_ref, w2_ref, b2_ref, w3_ref, b3_ref, o_ref):
    # fc1 + ReLU (f32 MXU accumulation regardless of compute dtype).
    h = jnp.dot(x_ref[...], w1_ref[...], preferred_element_type=jnp.float32)
    h = jnp.maximum(h + b1_ref[...], 0.0)
    # fc2 + ReLU
    h = jnp.dot(h.astype(w2_ref.dtype), w2_ref[...],
                preferred_element_type=jnp.float32)
    h = jnp.maximum(h + b2_ref[...], 0.0)
    # fc3 (no activation)
    h = jnp.dot(h.astype(w3_ref.dtype), w3_ref[...],
                preferred_element_type=jnp.float32)
    o_ref[...] = (h + b3_ref[...]).astype(o_ref.dtype)


# --------------------------------------------------------------------------- #
# One-time parameter preparation (pad to lane-dense shapes, cast once)
# --------------------------------------------------------------------------- #
class PreparedMLP(NamedTuple):
    w1: jax.Array
    b1: jax.Array
    w2: jax.Array
    b2: jax.Array
    w3: jax.Array
    b3: jax.Array
    obs_dim: int
    hid_dim: int
    out_dim: int


def prepare_mlp_params(w1, b1, w2, b2, w3, b3, *, compute_dtype=None):
    """Pad weights/biases to 128-lane-dense shapes and cast to compute dtype.

    Weights are [in, out] (i.e. torch_linear.weight.T); biases [out] or [1,out].
    Done ONCE so per-forward calls issue no pad/convert HBM traffic.
    Zero padding is semantics-preserving: padded input features hit zero weight
    rows, padded hidden units get bias 0 -> ReLU 0 -> zero rows into the next
    layer, padded output columns are sliced off by the caller.
    """
    obs_dim, hid_dim = w1.shape
    out_dim = w3.shape[1]
    if compute_dtype is None:
        # bf16 by default on v6e/v7x: ~2x+ MXU throughput, half the resident
        # weight VMEM/HBM traffic; f32 accumulation in-kernel preserves accuracy.
        compute_dtype = jnp.bfloat16 if (_IS_V6 or _IS_V7) else w1.dtype
    cdt = jnp.dtype(compute_dtype)

    obs_p = _round_up(obs_dim, _LANE)
    hid_p = _round_up(hid_dim, _LANE)
    out_p = _round_up(out_dim, _LANE)

    b1r = jnp.asarray(b1).reshape(1, -1)
    b2r = jnp.asarray(b2).reshape(1, -1)
    b3r = jnp.asarray(b3).reshape(1, -1)

    return PreparedMLP(
        w1=_pad2(jnp.asarray(w1), obs_p, hid_p).astype(cdt),
        b1=_pad2(b1r, 1, hid_p).astype(jnp.float32),
        w2=_pad2(jnp.asarray(w2), hid_p, hid_p).astype(cdt),
        b2=_pad2(b2r, 1, hid_p).astype(jnp.float32),
        w3=_pad2(jnp.asarray(w3), hid_p, out_p).astype(cdt),
        b3=_pad2(b3r, 1, out_p).astype(jnp.float32),
        obs_dim=int(obs_dim), hid_dim=int(hid_dim), out_dim=int(out_dim),
    )


# --------------------------------------------------------------------------- #
# Batch-tile selection (generation aware)
# --------------------------------------------------------------------------- #
def _pick_block(batch, block_b=None):
    b8 = _round_up(max(int(batch), 1), _SUBLANE)
    target = int(block_b) if block_b is not None else _DEFAULT_BLOCK_B
    if _NUM_TC > 1:
        # Ensure >= num_cores grid steps so both v7x TensorCores have work.
        per_core = _round_up(pl.cdiv(b8, _NUM_TC), _SUBLANE)
        target = min(target, per_core)
    block = min(target, b8)
    if block >= _MXU_ROWS:
        # Fill the MXU M-dimension per pass (256 rows on v6e/v7x, 128 on v5e).
        block = (block // _MXU_ROWS) * _MXU_ROWS
    return max(_SUBLANE, _round_up(block, _SUBLANE))


# --------------------------------------------------------------------------- #
# pallas_call plumbing
# --------------------------------------------------------------------------- #
def _resident(shape):
    # Constant index map + single buffer: fetched once, stays VMEM-resident
    # across all batch-grid steps (half the VMEM of default double-buffering).
    return pl.BlockSpec(shape, lambda i: (0, 0), pipeline_mode=pl.Buffered(1))


def _call_mlp_pallas(x_p, w1, b1, w2, b2, w3, b3, *, block, out_dtype):
    B_p, obs_p = x_p.shape
    hid_p = w1.shape[1]
    out_p = w3.shape[1]
    if B_p % block:
        raise ValueError(f"padded batch {B_p} must be a multiple of block {block}")
    if obs_p != w1.shape[0]:
        raise ValueError("x feature padding does not match prepared w1")
    grid = (B_p // block,)

    act_b = jnp.dtype(w1.dtype).itemsize
    out_b = jnp.dtype(out_dtype).itemsize

    in_specs = [
        pl.BlockSpec((block, obs_p), lambda i: (i, 0)),   # x tile (batch-tiled)
        _resident((obs_p, hid_p)),                        # w1
        _resident((1, hid_p)),                            # b1
        _resident((hid_p, hid_p)),                        # w2
        _resident((1, hid_p)),                            # b2
        _resident((hid_p, out_p)),                        # w3
        _resident((1, out_p)),                            # b3
    ]
    out_spec = pl.BlockSpec((block, out_p), lambda i: (i, 0))  # lane-dense store

    # ---- VMEM budget (single-buffered weights) & generation-aware cap -------
    weight_bytes = (obs_p * hid_p + hid_p * hid_p + hid_p * out_p) * act_b
    bias_bytes = (2 * hid_p + out_p) * 4
    vmem_needed = (
        2 * block * obs_p * act_b          # x tile, double-buffered
        + 2 * block * out_p * out_b        # out tile, double-buffered
        + weight_bytes + bias_bytes        # resident, single-buffered
        + 4 * block * hid_p * 4            # f32 intermediates / slack
    )
    cap = _vmem_capacity_bytes() - _VMEM_HEADROOM
    vmem_limit = int(min(cap, max(vmem_needed + (8 << 20), 32 << 20)))

    # ---- cost hint from PADDED shapes (what the MXU/DMA actually do) --------
    cost = pl.CostEstimate(
        flops=2 * B_p * (obs_p * hid_p + hid_p * hid_p + hid_p * out_p),
        transcendentals=0,
        bytes_accessed=(B_p * obs_p * act_b + weight_bytes + bias_bytes
                        + B_p * out_p * out_b),
    )

    return pl.pallas_call(
        _mlp_kernel,
        out_shape=jax.ShapeDtypeStruct((B_p, out_p), out_dtype),
        grid_spec=pltpu.PrefetchScalarGridSpec(
            num_scalar_prefetch=0,
            grid=grid,
            in_specs=in_specs,
            out_specs=out_spec,
        ),
        compiler_params=pltpu.CompilerParams(
            dimension_semantics=("parallel",),
            vmem_limit_bytes=vmem_limit,
        ),
        cost_estimate=cost,
    )(x_p, w1, b1, w2, b2, w3, b3)


@functools.partial(jax.jit, static_argnames=("block", "out_dim"))
def _mlp_forward_impl(x, w1, b1, w2, b2, w3, b3, *, block, out_dim):
    B, _ = x.shape
    obs_p = w1.shape[0]
    B_p = _round_up(B, block)
    x_p = _pad2(x, B_p, obs_p).astype(w1.dtype)
    out_p = _call_mlp_pallas(x_p, w1, b1, w2, b2, w3, b3,
                             block=block, out_dtype=x.dtype)
    return out_p[:B, :out_dim]


@functools.partial(jax.jit, static_argnames=("block",))
def _mlp_padded_impl(x_p, w1, b1, w2, b2, w3, b3, *, block):
    return _call_mlp_pallas(x_p.astype(w1.dtype), w1, b1, w2, b2, w3, b3,
                            block=block, out_dtype=x_p.dtype)


# --------------------------------------------------------------------------- #
# Public API
# --------------------------------------------------------------------------- #
def mlp_forward(x, params: PreparedMLP, *, block_b=None):
    """Fused 3-layer MLP forward. x: [B, obs_dim] -> [B, out_dim]."""
    if x.shape[1] != params.obs_dim:
        raise ValueError(f"x has {x.shape[1]} features, expected {params.obs_dim}")
    block = _pick_block(x.shape[0], block_b)
    return _mlp_forward_impl(x, params.w1, params.b1, params.w2, params.b2,
                             params.w3, params.b3,
                             block=block, out_dim=params.out_dim)


def mlp_forward_padded(x_padded, params: PreparedMLP, *, block):
    """Pre-padded I/O path: x_padded [B_p, obs_p] -> padded output [B_p, out_p].

    Skips the wrapper pad/slice HBM copies; the caller owns the padding.
    B_p must be a multiple of `block`, obs_p must equal params.w1.shape[0].
    """
    return _mlp_padded_impl(x_padded, params.w1, params.b1, params.w2,
                            params.b2, params.w3, params.b3, block=block)


# --------------------------------------------------------------------------- #
# Init (mirrors nn.Linear default init) and pure-JAX reference
# --------------------------------------------------------------------------- #
def init_mlp_params(key, obs_dim, hid_dim, out_dim, dtype=jnp.float32):
    """U[-1/sqrt(fan_in), +1/sqrt(fan_in)]; weights stored as [in, out]."""
    ks = jax.random.split(key, 6)

    def linear(kw, kb, fan_in, fan_out):
        bound = 1.0 / jnp.sqrt(fan_in)
        w = jax.random.uniform(kw, (fan_in, fan_out), dtype, -bound, bound)
        b = jax.random.uniform(kb, (1, fan_out), dtype, -bound, bound)
        return w, b

    w1, b1 = linear(ks[0], ks[1], obs_dim, hid_dim)
    w2, b2 = linear(ks[2], ks[3], hid_dim, hid_dim)
    w3, b3 = linear(ks[4], ks[5], hid_dim, out_dim)
    return w1, b1, w2, b2, w3, b3


def mlp_reference(x, w1, b1, w2, b2, w3, b3):
    h = jax.nn.relu(x @ w1 + b1)
    h = jax.nn.relu(h @ w2 + b2)
    return h @ w3 + b3


if __name__ == "__main__":
    obs_dim, hid_dim, out_dim = 16, 32, 4
    batch = 8

    key = jax.random.PRNGKey(0)
    k_x, k_p = jax.random.split(key)

    x = jax.random.normal(k_x, (batch, obs_dim), jnp.float32)
    raw = init_mlp_params(k_p, obs_dim, hid_dim, out_dim)
    ref = mlp_reference(x, *raw)

    # f32 compute path (explicit dtype so the tight check is generation-
    # independent even though bf16 is the default on v6e/v7x).
    params_f32 = prepare_mlp_params(*raw, compute_dtype=jnp.float32)
    out = jax.block_until_ready(mlp_forward(x, params_f32))
    assert out.shape == (batch, out_dim), out.shape
    assert jnp.allclose(out, ref, atol=1e-5, rtol=1e-5), "mismatch (f32)"

    # Ragged batch (not a multiple of the block) + multi-step batch grid.
    x2 = jax.random.normal(jax.random.PRNGKey(1), (300, obs_dim), jnp.float32)
    ref2 = mlp_reference(x2, *raw)
    out2 = jax.block_until_ready(mlp_forward(x2, params_f32, block_b=128))
    assert out2.shape == (300, out_dim), out2.shape
    assert jnp.allclose(out2, ref2, atol=1e-5, rtol=1e-5), "mismatch (ragged)"

    # Generation-aware default block size (512-target, MXU-row multiples).
    out2b = jax.block_until_ready(mlp_forward(x2, params_f32))
    assert jnp.allclose(out2b, ref2, atol=1e-5, rtol=1e-5), "mismatch (auto block)"

    # bf16 compute path (v6e/v7x MXU-friendly), f32 accumulation in-kernel.
    params_bf16 = prepare_mlp_params(*raw, compute_dtype=jnp.bfloat16)
    out3 = jax.block_until_ready(mlp_forward(x2, params_bf16))
    assert out3.shape == (300, out_dim), out3.shape
    assert jnp.allclose(out3, ref2, atol=1e-1, rtol=1e-1), "mismatch (bf16)"

    # Pre-padded I/O path: caller owns pad/slice, kernel sees lane-dense slabs.
    blk = _pick_block(batch, None)
    obs_p = params_f32.w1.shape[0]
    out_p = params_f32.w3.shape[1]
    x_pad = jnp.zeros((_round_up(batch, blk), obs_p), jnp.float32)
    x_pad = x_pad.at[:batch, :obs_dim].set(x)
    out_pad = jax.block_until_ready(mlp_forward_padded(x_pad, params_f32, block=blk))
    assert out_pad.shape == (_round_up(batch, blk), out_p), out_pad.shape
    assert jnp.allclose(out_pad[:batch, :out_dim], ref, atol=1e-5, rtol=1e-5), \
        "mismatch (pre-padded path)"

    print("KERNEL_OK")
</pallas_src>

<mosaic_0001>
module attributes {stable_mosaic.version = 11 : i64} {
  func.func @_mlp_kernel(%arg0: i32, %arg1: memref<8x128xf32, #tpu.memory_space<vmem>>, %arg2: memref<128x128xf32, #tpu.memory_space<vmem>>, %arg3: memref<1x128xf32, #tpu.memory_space<vmem>>, %arg4: memref<128x128xf32, #tpu.memory_space<vmem>>, %arg5: memref<1x128xf32, #tpu.memory_space<vmem>>, %arg6: memref<128x128xf32, #tpu.memory_space<vmem>>, %arg7: memref<1x128xf32, #tpu.memory_space<vmem>>, %arg8: memref<8x128xf32, #tpu.memory_space<vmem>>) attributes {dimension_semantics = [#tpu.dimension_semantics<parallel>], iteration_bounds = array<i64: 1>, scalar_prefetch = 0 : i64, scratch_operands = 0 : i64, tpu.core_type = #tpu.core_type<tc>, window_params = [{transform_indices = @transform_0, window_bounds = array<i64: 8, 128>}, {pipeline_mode = #tpu.pipeline_mode<synchronous>, transform_indices = @transform_1, window_bounds = array<i64: 128, 128>}, {pipeline_mode = #tpu.pipeline_mode<synchronous>, transform_indices = @transform_2, window_bounds = array<i64: 1, 128>}, {pipeline_mode = #tpu.pipeline_mode<synchronous>, transform_indices = @transform_3, window_bounds = array<i64: 128, 128>}, {pipeline_mode = #tpu.pipeline_mode<synchronous>, transform_indices = @transform_4, window_bounds = array<i64: 1, 128>}, {pipeline_mode = #tpu.pipeline_mode<synchronous>, transform_indices = @transform_5, window_bounds = array<i64: 128, 128>}, {pipeline_mode = #tpu.pipeline_mode<synchronous>, transform_indices = @transform_6, window_bounds = array<i64: 1, 128>}, {transform_indices = @transform_7, window_bounds = array<i64: 8, 128>}]} {
    %c0 = arith.constant 0 : index
    %c0_0 = arith.constant 0 : index
    %0 = vector.load %arg1[%c0, %c0_0] : memref<8x128xf32, #tpu.memory_space<vmem>>, vector<8x128xf32>
    %c0_1 = arith.constant 0 : index
    %c0_2 = arith.constant 0 : index
    %1 = vector.load %arg2[%c0_1, %c0_2] : memref<128x128xf32, #tpu.memory_space<vmem>>, vector<128x128xf32>
    %cst = arith.constant dense<0.000000e+00> : vector<8x128xf32>
    %2 = tpu.matmul %0, %1, %cst {dimension_numbers = #tpu.dot_dimension_numbers<[1], [0], [0], [1], [0, 0, 1, 1], [], []>} : vector<8x128xf32>, vector<128x128xf32>, vector<8x128xf32> -> vector<8x128xf32>
    %c0_3 = arith.constant 0 : index
    %c0_4 = arith.constant 0 : index
    %3 = vector.load %arg3[%c0_3, %c0_4] : memref<1x128xf32, #tpu.memory_space<vmem>>, vector<1x128xf32>
    %4 = vector.broadcast %3 : vector<1x128xf32> to vector<8x128xf32>
    %5 = arith.addf %2, %4 : vector<8x128xf32>
    %cst_5 = arith.constant 0.000000e+00 : f32
    %6 = vector.broadcast %cst_5 : f32 to vector<8x128xf32>
    %7 = arith.maximumf %5, %6 : vector<8x128xf32>
    %c0_6 = arith.constant 0 : index
    %c0_7 = arith.constant 0 : index
    %8 = vector.load %arg4[%c0_6, %c0_7] : memref<128x128xf32, #tpu.memory_space<vmem>>, vector<128x128xf32>
    %cst_8 = arith.constant dense<0.000000e+00> : vector<8x128xf32>
    %9 = tpu.matmul %7, %8, %cst_8 {dimension_numbers = #tpu.dot_dimension_numbers<[1], [0], [0], [1], [0, 0, 1, 1], [], []>} : vector<8x128xf32>, vector<128x128xf32>, vector<8x128xf32> -> vector<8x128xf32>
    %c0_9 = arith.constant 0 : index
    %c0_10 = arith.constant 0 : index
    %10 = vector.load %arg5[%c0_9, %c0_10] : memref<1x128xf32, #tpu.memory_space<vmem>>, vector<1x128xf32>
    %11 = vector.broadcast %10 : vector<1x128xf32> to vector<8x128xf32>
    %12 = arith.addf %9, %11 : vector<8x128xf32>
    %cst_11 = arith.constant 0.000000e+00 : f32
    %13 = vector.broadcast %cst_11 : f32 to vector<8x128xf32>
    %14 = arith.maximumf %12, %13 : vector<8x128xf32>
    %c0_12 = arith.constant 0 : index
    %c0_13 = arith.constant 0 : index
    %15 = vector.load %arg6[%c0_12, %c0_13] : memref<128x128xf32, #tpu.memory_space<vmem>>, vector<128x128xf32>
    %cst_14 = arith.constant dense<0.000000e+00> : vector<8x128xf32>
    %16 = tpu.matmul %14, %15, %cst_14 {dimension_numbers = #tpu.dot_dimension_numbers<[1], [0], [0], [1], [0, 0, 1, 1], [], []>} : vector<8x128xf32>, vector<128x128xf32>, vector<8x128xf32> -> vector<8x128xf32>
    %c0_15 = arith.constant 0 : index
    %c0_16 = arith.constant 0 : index
    %17 = vector.load %arg7[%c0_15, %c0_16] : memref<1x128xf32, #tpu.memory_space<vmem>>, vector<1x128xf32>
    %18 = vector.broadcast %17 : vector<1x128xf32> to vector<8x128xf32>
    %19 = arith.addf %16, %18 : vector<8x128xf32>
    %c0_17 = arith.constant 0 : index
    %c0_18 = arith.constant 0 : index
    %20 = vector.load %arg8[%c0_17, %c0_18] : memref<8x128xf32, #tpu.memory_space<vmem>>, vector<8x128xf32>
    tpu.vector_store %arg8[%c0_17, %c0_18], %19 {strides = array<i32>} : memref<8x128xf32, #tpu.memory_space<vmem>>, vector<8x128xf32>,
    return
  }
  func.func @transform_0(%arg0: i32) -> (i32, i32) {
    %c0_i32 = arith.constant 0 : i32
    %c0_i32_0 = arith.constant 0 : i32
    return %arg0, %c0_i32 : i32, i32
  }
  func.func @transform_1(%arg0: i32) -> (i32, i32) {
    %c0_i32 = arith.constant 0 : i32
    %c0_i32_0 = arith.constant 0 : i32
    %c0_i32_1 = arith.constant 0 : i32
    return %c0_i32, %c0_i32_0 : i32, i32
  }
  func.func @transform_2(%arg0: i32) -> (i32, i32) {
    %c0_i32 = arith.constant 0 : i32
    %c0_i32_0 = arith.constant 0 : i32
    %c0_i32_1 = arith.constant 0 : i32
    return %c0_i32, %c0_i32_0 : i32, i32
  }
  func.func @transform_3(%arg0: i32) -> (i32, i32) {
    %c0_i32 = arith.constant 0 : i32
    %c0_i32_0 = arith.constant 0 : i32
    %c0_i32_1 = arith.constant 0 : i32
    return %c0_i32, %c0_i32_0 : i32, i32
  }
  func.func @transform_4(%arg0: i32) -> (i32, i32) {
    %c0_i32 = arith.constant 0 : i32
    %c0_i32_0 = arith.constant 0 : i32
    %c0_i32_1 = arith.constant 0 : i32
    return %c0_i32, %c0_i32_0 : i32, i32
  }
  func.func @transform_5(%arg0: i32) -> (i32, i32) {
    %c0_i32 = arith.constant 0 : i32
    %c0_i32_0 = arith.constant 0 : i32
    %c0_i32_1 = arith.constant 0 : i32
    return %c0_i32, %c0_i32_0 : i32, i32
  }
  func.func @transform_6(%arg0: i32) -> (i32, i32) {
    %c0_i32 = arith.constant 0 : i32
    %c0_i32_0 = arith.constant 0 : i32
    %c0_i32_1 = arith.constant 0 : i32
    return %c0_i32, %c0_i32_0 : i32, i32
  }
  func.func @transform_7(%arg0: i32) -> (i32, i32) {
    %c0_i32 = arith.constant 0 : i32
    %c0_i32_0 = arith.constant 0 : i32
    return %arg0, %c0_i32 : i32, i32
  }
}

</mosaic_0001>

<bundles_post_ra>
// kernel: _mlp_forward_impl.1
= control target key start
LH: loop header
LB: loop body
LE: loop exit
PB: predicated region body
PF: predicated region fallthrough
CT: control target
= control target key end

     0   :  { %12 = vsyncpa [#allocation3], 0  ;;  %s356_s0 = inlined_call_operand.vmem [shape: f32[8,128], index: 0, kind: input, shape index: {}]   ;;  %s357_s1 = inlined_call_operand.hbm [shape: f32[128,128], index: 1, kind: input, shape index: {}]   ;;  %s358_s2 = inlined_call_operand.vmem [shape: f32[1,128], index: 2, kind: input, shape index: {}]   ;;  %s359_s3 = inlined_call_operand.hbm [shape: f32[128,128], index: 3, kind: input, shape index: {}]   ;;  %s360_s4 = inlined_call_operand.vmem [shape: f32[1,128], index: 4, kind: input, shape index: {}]   ;;  %s361_s5 = inlined_call_operand.hbm [shape: f32[128,128], index: 5, kind: input, shape index: {}]   ;;  %s362_s6 = inlined_call_operand.vmem [shape: f32[1,128], index: 6, kind: input, shape index: {}]   ;;  %s363_s7 = inlined_call_operand.vmem [shape: f32[8,128], index: 7, kind: output, shape index: {}]  }
   0x1   :  { %13 = vsyncpa [#allocation5], 0  ;;  %s35_s26 = sshll.u32 %s359_s3, 4  ;;  %s287_s27 = smov [#allocation4]   ;;  %s36_s26 = int_to_ptr.hbm [resolvable:$true] %s35_s26 }
   0x2   :  { %s37_s28 = sshll.u32 %s287_s27, 4  ;;  %s20_s8 = sshll.u32 %s357_s1, 4  ;;  %s38_s28 = int_to_ptr.vmem [resolvable:$true] %s37_s28  ;;  %s21_s8 = int_to_ptr.hbm [resolvable:$true] %s20_s8 }
   0x3   :  { %s288_s9 = smov 128   ;;  %s289_s10 = smov 8  }
   0x4   :  { %43 = dma.hbm_to_vmem [thread:$0]  %s36_s26, 2048, %s38_s28, [#allocation5], %s288_s9, %s288_s9, %s289_s10  }
   0x5   :  { %s290_s11 = smov [#allocation2]   ;;  %s50_s15 = sshll.u32 %s361_s5, 4  ;;  %s51_s15 = int_to_ptr.hbm [resolvable:$true] %s50_s15 }
   0x6   :  { %s22_s12 = sshll.u32 %s290_s11, 4  ;;  %s291_s3 = smov [#allocation6]   ;;  %s23_s12 = int_to_ptr.vmem [resolvable:$true] %s22_s12 }
   0x7   :  { %28 = dma.hbm_to_vmem [thread:$0]  %s21_s8, 2048, %s23_s12, [#allocation3], %s288_s9, %s288_s9, %s289_s10  }
   0x8   :  { %s52_s16 = sshll.u32 %s291_s3, 4  ;;  %s53_s16 = int_to_ptr.vmem [resolvable:$true] %s52_s16 }
   0x9   :  { %58 = dma.hbm_to_vmem [thread:$0]  %s51_s15, 2048, %s53_s16, [#allocation5], %s288_s9, %s288_s9, %s289_s10  }
   0xa   :  { %283 = dma.done.wait [#allocation3], 2048  }
   0xb   :  { %284 = vsyncadd [#allocation3], 4294965248 }
   0xc   :  { %285 = dma.done.wait [#allocation5], 4096  }
   0xd   :  { %286 = vsyncadd [#allocation5], 4294963200  ;;  %v89_v0 = vld [vmem:[#allocation2 + $0x78] sm:$0xff]  ;;  %v88_v1 = vld [vmem:[#allocation2 + $0x70] sm:$0xff] }
   0xe   :  { %94 = vmatpush.msra.mxu0 %v89_v0  ;;  %v87_v2 = vld [vmem:[#allocation2 + $0x68] sm:$0xff]  ;;  %v86_v3 = vld [vmem:[#allocation2 + $0x60] sm:$0xff]  ;;  %v130_v4 = vld [vmem:[#allocation4 + $0x78] sm:$0xff] }
   0xf   :  { %v85_v5 = vld [vmem:[#allocation2 + $0x58] sm:$0xff]  ;;  %135 = vmatpush.msra.mxu1 %v130_v4  ;;  %v129_v6 = vld [vmem:[#allocation4 + $0x70] sm:$0xff]  ;;  %v128_v7 = vld [vmem:[#allocation4 + $0x68] sm:$0xff] }
  0x10   :  { %95 = vmatpush.msra.mxu0 %v88_v1  ;;  %v84_v8 = vld [vmem:[#allocation2 + $0x50] sm:$0xff]  ;;  %v127_v9 = vld [vmem:[#allocation4 + $0x60] sm:$0xff]  ;;  %v83_v10 = vld [vmem:[#allocation2 + $0x48] sm:$0xff] }
  0x11   :  { %136 = vmatpush.msra.mxu1 %v129_v6  ;;  %v126_v11 = vld [vmem:[#allocation4 + $0x58] sm:$0xff]  ;;  %v82_v12 = vld [vmem:[#allocation2 + $0x40] sm:$0xff]  ;;  %v125_v13 = vld [vmem:[#allocation4 + $0x50] sm:$0xff] }
  0x12   :  { %96 = vmatpush.msra.mxu0 %v87_v2  ;;  %v81_v14 = vld [vmem:[#allocation2 + $0x38] sm:$0xff]  ;;  %v124_v15 = vld [vmem:[#allocation4 + $0x48] sm:$0xff]  ;;  %v80_v16 = vld [vmem:[#allocation2 + $0x30] sm:$0xff] }
  0x13   :  { %137 = vmatpush.msra.mxu1 %v128_v7  ;;  %v123_v17 = vld [vmem:[#allocation4 + $0x40] sm:$0xff]  ;;  %v79_v18 = vld [vmem:[#allocation2 + $0x28] sm:$0xff]  ;;  %v122_v19 = vld [vmem:[#allocation4 + $0x38] sm:$0xff] }
  0x14   :  { %97 = vmatpush.msra.mxu0 %v86_v3  ;;  %v78_v20 = vld [vmem:[#allocation2 + $0x20] sm:$0xff]  ;;  %v121_v21 = vld [vmem:[#allocation4 + $0x30] sm:$0xff]  ;;  %v77_v22 = vld [vmem:[#allocation2 + $0x18] sm:$0xff] }
  0x15   :  { %138 = vmatpush.msra.mxu1 %v127_v9  ;;  %v120_v23 = vld [vmem:[#allocation4 + $0x28] sm:$0xff]  ;;  %v76_v24 = vld [vmem:[#allocation2 + $0x10] sm:$0xff]  ;;  %v119_v25 = vld [vmem:[#allocation4 + $0x20] sm:$0xff] }
  0x16   :  { %98 = vmatpush.msra.mxu0 %v85_v5  ;;  %v75_v26 = vld [vmem:[#allocation2 + $0x8] sm:$0xff]  ;;  %v118_v27 = vld [vmem:[#allocation4 + $0x18] sm:$0xff]  ;;  %v74_v28 = vld [vmem:[#allocation2] sm:$0xff] }
  0x17   :  { %139 = vmatpush.msra.mxu1 %v126_v11  ;;  %v73_v29 = vld [vmem:[%s356_s0] sm:$0xff]  ;;  %v117_v30 = vld [vmem:[#allocation4 + $0x10] sm:$0xff]  ;;  %v116_v31 = vld [vmem:[#allocation4 + $0x8] sm:$0xff] }
  0x18   :  { %99 = vmatpush.msra.mxu0 %v84_v8  ;;  %v115_v32 = vld [vmem:[#allocation4] sm:$0xff]  ;;  %v171_v33 = vld [vmem:[#allocation6 + $0x78] sm:$0xff]  ;;  %v170_v34 = vld [vmem:[#allocation6 + $0x70] sm:$0xff] }
  0x19   :  { %140 = vmatpush.msra.mxu1 %v125_v13  ;;  %176 = vmatpush.msra.mxu2 %v171_v33  ;;  %v169_v35 = vld [vmem:[#allocation6 + $0x68] sm:$0xff]  ;;  %v168_v36 = vld [vmem:[#allocation6 + $0x60] sm:$0xff]  ;;  %v167_v37 = vld [vmem:[#allocation6 + $0x58] sm:$0xff] }
  0x1a   :  { %100 = vmatpush.msra.mxu0 %v83_v10  ;;  %v166_v38 = vld [vmem:[#allocation6 + $0x50] sm:$0xff]  ;;  %v165_v39 = vld [vmem:[#allocation6 + $0x48] sm:$0xff]  ;;  %v164_v40 = vld [vmem:[#allocation6 + $0x40] sm:$0xff] }
  0x1b   :  { %141 = vmatpush.msra.mxu1 %v124_v15  ;;  %177 = vmatpush.msra.mxu2 %v170_v34  ;;  %v163_v41 = vld [vmem:[#allocation6 + $0x38] sm:$0xff]  ;;  %v162_v42 = vld [vmem:[#allocation6 + $0x30] sm:$0xff]  ;;  %v161_v43 = vld [vmem:[#allocation6 + $0x28] sm:$0xff] }
  0x1c   :  { %101 = vmatpush.msra.mxu0 %v82_v12  ;;  %v160_v44 = vld [vmem:[#allocation6 + $0x20] sm:$0xff]  ;;  %v159_v45 = vld [vmem:[#allocation6 + $0x18] sm:$0xff]  ;;  %v158_v50 = vld [vmem:[#allocation6 + $0x10] sm:$0xff] }
  0x1d   :  { %142 = vmatpush.msra.mxu1 %v123_v17  ;;  %178 = vmatpush.msra.mxu2 %v169_v35  ;;  %v208_v46 = vld [vmem:[%s358_s2] ss:$0 sm:$0xff]  ;;  %v157_v51 = vld [vmem:[#allocation6 + $0x8] sm:$0xff] }
  0x1e   :  { %102 = vmatpush.msra.mxu0 %v81_v14  ;;  %v156_v52 = vld [vmem:[#allocation6] sm:$0xff] }
  0x1f   :  { %143 = vmatpush.msra.mxu1 %v122_v19  ;;  %179 = vmatpush.msra.mxu2 %v168_v36  ;;  %v209_v53 = vld [vmem:[%s360_s4] ss:$0 sm:$0xff] }
  0x20   :  { %103 = vmatpush.msra.mxu0 %v80_v16  ;;  %v210_v57 = vld [vmem:[%s362_s6] ss:$0 sm:$0xff] }
  0x21   :  { %144 = vmatpush.msra.mxu1 %v121_v21  ;;  %180 = vmatpush.msra.mxu2 %v167_v37 }
  0x22   :  { %104 = vmatpush.msra.mxu0 %v79_v18 }
  0x23   :  { %145 = vmatpush.msra.mxu1 %v120_v23  ;;  %181 = vmatpush.msra.mxu2 %v166_v38 }
  0x24   :  { %105 = vmatpush.msra.mxu0 %v78_v20 }
  0x25   :  { %146 = vmatpush.msra.mxu1 %v119_v25  ;;  %182 = vmatpush.msra.mxu2 %v165_v39 }
  0x26   :  { %106 = vmatpush.msra.mxu0 %v77_v22 }
  0x27   :  { %147 = vmatpush.msra.mxu1 %v118_v27  ;;  %183 = vmatpush.msra.mxu2 %v164_v40 }
  0x28   :  { %107 = vmatpush.msra.mxu0 %v76_v24 }
  0x29   :  { %148 = vmatpush.msra.mxu1 %v117_v30  ;;  %184 = vmatpush.msra.mxu2 %v163_v41 }
  0x2a   :  { %108 = vmatpush.msra.mxu0 %v75_v26 }
  0x2b   :  { %149 = vmatpush.msra.mxu1 %v116_v31  ;;  %185 = vmatpush.msra.mxu2 %v162_v42 }
  0x2c   :  { %109 = vmatpush.msra.mxu0 %v74_v28 }
  0x2d   :  { %110 = vmatmul.f32.vlgmr.msra.gmra.mxu0 %v73_v29  ;;  %150 = vmatpush.msra.mxu1 %v115_v32 }
  0x2e   :  { %186 = vmatpush.msra.mxu2 %v161_v43 }
  0x30   :  { %187 = vmatpush.msra.mxu2 %v160_v44 }
  0x32   :  { %188 = vmatpush.msra.mxu2 %v159_v45 }
  0x34   :  { %189 = vmatpush.msra.mxu2 %v158_v50 }
  0x36   :  { %190 = vmatpush.msra.mxu2 %v157_v51 }
  0x38   :  { %191 = vmatpush.msra.mxu2 %v156_v52 }
  0xaa   :  { %v111_v47 = vpop.f32.mrf.mxu0 }
  0xab   :  { %v112_v48 = vadd.f32 %v208_v46, %v111_v47 }
  0xad   :  { %v114_v49 = vmax.f32 %v112_v48, 0.0 }
  0xaf   :  { %151 = vmatmul.f32.vlgmr.msra.gmra.mxu1 %v114_v49 }
 0x12c   :  { %v152_v54 = vpop.f32.mrf.mxu1 }
 0x12d   :  { %v153_v55 = vadd.f32 %v209_v53, %v152_v54 }
 0x12f   :  { %v155_v56 = vmax.f32 %v153_v55, 0.0 }
 0x131   :  { %192 = vmatmul.f32.vlgmr.msra.gmra.mxu2 %v155_v56 }
 0x1b4   :  { %v193_v58 = vpop.f32.mrf.mxu2 }
 0x1b5   :  { %v194_v59 = vadd.f32 %v210_v57, %v193_v58 }
 0x1b7   :  { %196 = vst [vmem:[%s363_s7] sm:$0xff] %v194_v59 }
 0x1b8   :  { %201 = vsyncpa [#allocation3], 1 }
 0x1b9   :  { %202 = vsyncpa [#allocation5], 1 }

</bundles_post_ra>
